<compile_context>
chip_gen: v6e
topology: v6e:2x2x1
jax: 0.10.0
libtpu: 0.0.40
codegen_flags: <defaults>
</compile_context>

<pallas_src>
import jax
import jax.numpy as jnp
from jax.experimental import pallas as pl
from jax.experimental.pallas import tpu as pltpu


# Residents (weight / bias / embedding) above this size request single-buffering.
_RESIDENT_SINGLE_BUFFER_MIN_BYTES = 1 << 20


def _physical_vmem_bytes():
    """Per-TensorCore physical VMEM (generation aware); conservative on failure."""
    try:
        info = pltpu.get_tpu_info()
        cap = getattr(info, "vmem_capacity_bytes", None)
        if cap:
            return int(cap)
    except Exception:
        pass
    return 64 * 1024 * 1024  # v7x per-TC VMEM: safe lower bound on every generation


def _vmem_budgets():
    """(single-buffered x+out tile budget, requested vmem_limit_bytes)."""
    phys = _physical_vmem_bytes()
    # Request at most ~75% of physical VMEM (headroom for Mosaic internal scratch),
    # capped at 96 MiB on 128 MiB parts (v5e/v6e); ~48 MiB on v7x's 64 MiB.
    vmem_limit = min(int(phys * 0.75), 96 * 1024 * 1024)
    # Pallas double-buffers the x and out blocks, and the resident weight / bias /
    # embedding also live in VMEM, so keep the single-buffered tile budget at ~40%
    # of the limit (after an 8 MiB reserve).  v6e/v5e ~35 MiB, v7x ~16 MiB.
    tile_budget = max(2 * 1024 * 1024, (vmem_limit - 8 * 1024 * 1024) * 2 // 5)
    return tile_budget, vmem_limit


def _divisors(n):
    divs = set()
    i = 1
    while i * i <= n:
        if n % i == 0:
            divs.add(i)
            divs.add(n // i)
        i += 1
    return sorted(divs)


def _pick_seq_tile(S, per_row_bytes, budget_bytes, sublane):
    """Largest tS dividing S that is a multiple of `sublane` (or == S) and fits budget."""
    max_rows = budget_bytes // max(per_row_bytes, 1)
    if S <= max_rows:
        return S  # whole sequence fits; block == full dim is always legal
    divs = _divisors(S)
    fitting = [d for d in divs if d % sublane == 0 and d <= max_rows]
    if fitting:
        return max(fitting)
    legal = [d for d in divs if d % sublane == 0]
    if legal:
        # Nothing fits the soft budget: take the smallest legal tile instead of the
        # old `tS = S` fallback (which could exceed v7x's physical VMEM).
        return min(legal)
    # TODO(synk): S has no multiple-of-sublane divisor; the full-dim block may exceed
    # the budget for extreme shapes.
    return S


def _pick_batch_tile(B, bytes_per_batch_row, budget_bytes):
    limit = max(1, budget_bytes // max(bytes_per_batch_row, 1))
    fitting = [d for d in _divisors(B) if d <= limit]
    return max(fitting) if fitting else 1


def _make_kernel(Bt, tS, Dx, H, lane_aligned_split):
    def kernel(x_ref, emb_ref, w_ref, b_ref, o_ref):
        # Recompute the tiny FC + ReLU every grid step: Bt*E*H MACs on an otherwise
        # idle MXU, fully hidden under the HBM-bound stores.  No cross-step state, so
        # both grid axes stay "parallel".
        row0 = pl.multiple_of(pl.program_id(0) * Bt, Bt)
        emb = emb_ref[pl.ds(row0, Bt), :]                                   # (Bt, E)
        h = jnp.dot(emb, w_ref[...], preferred_element_type=jnp.float32)   # (Bt, H)
        h = jnp.maximum(h + b_ref[...], 0.0).astype(o_ref.dtype)           # cast once
        h_b = jnp.broadcast_to(h[:, None, :], (Bt, tS, H))
        x = x_ref[...].astype(o_ref.dtype)

        if lane_aligned_split:
            # Concat realised as two disjoint, lane-aligned (unmasked) stores.
            o_ref[:, :, :Dx] = x
            o_ref[:, :, Dx:] = h_b
        else:
            # Unaligned Dx: concatenate in registers so the single store stays
            # lane-dense instead of two masked partial stores at the Dx boundary.
            o_ref[...] = jnp.concatenate([x, h_b], axis=-1)

    return kernel


def custom_conditioning_layer(x, embedding, weight, bias, *,
                              batch_tile=None, seq_tile=None):
    """x: (B, S, Dx), embedding: (B, E), weight: (H, E), bias: (H,) -> (B, S, Dx+H)."""
    B, S, Dx = x.shape
    H, E = weight.shape
    assert embedding.shape == (B, E), embedding.shape
    assert bias.shape == (H,), bias.shape

    itemsize = jnp.dtype(x.dtype).itemsize
    sublane = max(8, 32 // itemsize)                 # 8 f32 / 16 bf16 / 32 int8-fp8
    per_row_bytes = (Dx + (Dx + H)) * itemsize       # x + out bytes per (batch, seq) elem

    tile_budget, vmem_limit = _vmem_budgets()

    # Grow tS first (contiguous per-batch-row DMA), then Bt when the sequence is small.
    tS = _pick_seq_tile(S, per_row_bytes, tile_budget, sublane) if seq_tile is None \
        else int(seq_tile)
    assert S % tS == 0 and (tS % sublane == 0 or tS == S), "bad sequence tile"

    if batch_tile is None:
        Bt = _pick_batch_tile(B, S * per_row_bytes, tile_budget) if tS == S else 1
    else:
        Bt = int(batch_tile)
    assert B % Bt == 0, "batch_tile must divide the batch dimension"

    w_t = weight.T                 # (E, H): kernel computes emb @ w_t on the MXU
    b2d = bias.reshape(1, H)       # 2-D for a TPU-friendly (sublane, lane) layout

    lane_aligned_split = (Dx % 128 == 0)

    def _resident_spec(shape, nbytes):
        # Fully resident block (constant index map; block == full array dims so small
        # leading dims like B=2 are legal).  Large residents skip double-buffering.
        index_map = (lambda b, s: (0, 0))
        if nbytes >= _RESIDENT_SINGLE_BUFFER_MIN_BYTES:
            return pl.BlockSpec(shape, index_map, pipeline_mode=pl.Buffered(1))
        return pl.BlockSpec(shape, index_map)

    grid = (B // Bt, S // tS)
    out_shape = jax.ShapeDtypeStruct((B, S, Dx + H), x.dtype)

    return pl.pallas_call(
        _make_kernel(Bt, tS, Dx, H, lane_aligned_split),
        out_shape=out_shape,
        grid_spec=pltpu.PrefetchScalarGridSpec(
            num_scalar_prefetch=0,
            grid=grid,
            in_specs=[
                pl.BlockSpec((Bt, tS, Dx), lambda b, s: (b, s, 0)),          # x tile
                _resident_spec((B, E), B * E * itemsize),                    # embedding
                _resident_spec((E, H), E * H * jnp.dtype(w_t.dtype).itemsize),  # weight
                _resident_spec((1, H), H * jnp.dtype(b2d.dtype).itemsize),   # bias
            ],
            out_specs=pl.BlockSpec((Bt, tS, Dx + H), lambda b, s: (b, s, 0)),
        ),
        compiler_params=pltpu.CompilerParams(
            # FC is recomputed per tile, so there is no cross-step state: both axes
            # are independent -> megacore / v7x dual-TC can shard either of them.
            dimension_semantics=("parallel", "parallel"),
            vmem_limit_bytes=vmem_limit,
        ),
    )(x, embedding, w_t, b2d)


def reference(x, embedding, weight, bias):
    h = jnp.maximum(embedding @ weight.T + bias, 0.0)                  # (B, H)
    h = jnp.broadcast_to(h[:, None, :], (x.shape[0], x.shape[1], h.shape[-1]))
    return jnp.concatenate([x, h], axis=-1)


if __name__ == "__main__":
    key = jax.random.PRNGKey(0)

    # --- Test 1: lane-aligned split (Dx, H multiples of 128), auto tiling ---------
    B, S, Dx, E, H = 2, 64, 128, 32, 128
    k_x, k_e, k_w, k_b = jax.random.split(key, 4)
    x = jax.random.normal(k_x, (B, S, Dx), dtype=jnp.float32)
    embedding = jax.random.normal(k_e, (B, E), dtype=jnp.float32)
    weight = jax.random.normal(k_w, (H, E), dtype=jnp.float32) * (1.0 / jnp.sqrt(E))
    bias = jax.random.normal(k_b, (H,), dtype=jnp.float32) * 0.01

    ref = reference(x, embedding, weight, bias)
    out = jax.block_until_ready(custom_conditioning_layer(x, embedding, weight, bias))
    assert out.shape == (B, S, Dx + H), out.shape
    assert jnp.allclose(out, ref, atol=1e-5, rtol=1e-5), "mismatch (auto tiling)"

    # --- Test 2: explicit sequence tiling (FC recomputed per seq tile) -------------
    out2 = jax.block_until_ready(
        custom_conditioning_layer(x, embedding, weight, bias, batch_tile=1, seq_tile=16))
    assert jnp.allclose(out2, ref, atol=1e-5, rtol=1e-5), "mismatch (seq-tiled path)"

    # --- Test 3: unaligned concat split (Dx not a multiple of 128) -----------------
    Dx2, H2 = 64, 64
    k_x2, k_e2, k_w2, k_b2 = jax.random.split(jax.random.PRNGKey(1), 4)
    x2 = jax.random.normal(k_x2, (B, S, Dx2), dtype=jnp.float32)
    emb2 = jax.random.normal(k_e2, (B, E), dtype=jnp.float32)
    w2 = jax.random.normal(k_w2, (H2, E), dtype=jnp.float32) * (1.0 / jnp.sqrt(E))
    b2 = jax.random.normal(k_b2, (H2,), dtype=jnp.float32) * 0.01
    ref3 = reference(x2, emb2, w2, b2)
    out3 = jax.block_until_ready(custom_conditioning_layer(x2, emb2, w2, b2))
    assert out3.shape == (B, S, Dx2 + H2), out3.shape
    assert jnp.allclose(out3, ref3, atol=1e-5, rtol=1e-5), "mismatch (unaligned Dx)"

    print("KERNEL_OK")
</pallas_src>

<mosaic_0001>
module attributes {stable_mosaic.version = 11 : i64} {
  func.func @kernel(%arg0: i32, %arg1: i32, %arg2: memref<2x64x128xf32, #tpu.memory_space<vmem>>, %arg3: memref<2x32xf32, #tpu.memory_space<vmem>>, %arg4: memref<32x128xf32, #tpu.memory_space<vmem>>, %arg5: memref<1x128xf32, #tpu.memory_space<vmem>>, %arg6: memref<2x64x256xf32, #tpu.memory_space<vmem>>) attributes {dimension_semantics = [#tpu.dimension_semantics<parallel>, #tpu.dimension_semantics<parallel>], iteration_bounds = array<i64: 1, 1>, scalar_prefetch = 0 : i64, scratch_operands = 0 : i64, tpu.core_type = #tpu.core_type<tc>, window_params = [{transform_indices = @transform_0, window_bounds = array<i64: 2, 64, 128>}, {pipeline_mode = #tpu.pipeline_mode<synchronous>, transform_indices = @transform_1, window_bounds = array<i64: 2, 32>}, {pipeline_mode = #tpu.pipeline_mode<synchronous>, transform_indices = @transform_2, window_bounds = array<i64: 32, 128>}, {pipeline_mode = #tpu.pipeline_mode<synchronous>, transform_indices = @transform_3, window_bounds = array<i64: 1, 128>}, {transform_indices = @transform_4, window_bounds = array<i64: 2, 64, 256>}]} {
    %c2_i32 = arith.constant 2 : i32
    %0 = arith.muli %arg0, %c2_i32 : i32
    %1 = tpu.assume_multiple %0, 2 : i32
    %2 = arith.index_cast %1 : i32 to index
    %c0 = arith.constant 0 : index
    %3 = vector.load %arg3[%2, %c0] : memref<2x32xf32, #tpu.memory_space<vmem>>, vector<2x32xf32>
    %c0_0 = arith.constant 0 : index
    %c0_1 = arith.constant 0 : index
    %4 = vector.load %arg4[%c0_0, %c0_1] : memref<32x128xf32, #tpu.memory_space<vmem>>, vector<32x128xf32>
    %cst = arith.constant dense<0.000000e+00> : vector<2x128xf32>
    %5 = tpu.matmul %3, %4, %cst {dimension_numbers = #tpu.dot_dimension_numbers<[1], [0], [0], [1], [0, 0, 1, 1], [], []>} : vector<2x32xf32>, vector<32x128xf32>, vector<2x128xf32> -> vector<2x128xf32>
    %c0_2 = arith.constant 0 : index
    %c0_3 = arith.constant 0 : index
    %6 = vector.load %arg5[%c0_2, %c0_3] : memref<1x128xf32, #tpu.memory_space<vmem>>, vector<1x128xf32>
    %7 = vector.broadcast %6 : vector<1x128xf32> to vector<2x128xf32>
    %8 = arith.addf %5, %7 : vector<2x128xf32>
    %cst_4 = arith.constant 0.000000e+00 : f32
    %9 = vector.broadcast %cst_4 : f32 to vector<2x128xf32>
    %10 = arith.maximumf %8, %9 : vector<2x128xf32>
    %11 = vector.shape_cast %10 : vector<2x128xf32> to vector<2x1x128xf32>
    %12 = vector.shape_cast %11 : vector<2x1x128xf32> to vector<2x1x128xf32>
    %13 = vector.broadcast %12 : vector<2x1x128xf32> to vector<2x64x128xf32>
    %c0_5 = arith.constant 0 : index
    %c0_6 = arith.constant 0 : index
    %c0_7 = arith.constant 0 : index
    %14 = vector.load %arg2[%c0_5, %c0_6, %c0_7] : memref<2x64x128xf32, #tpu.memory_space<vmem>>, vector<2x64x128xf32>
    %c0_8 = arith.constant 0 : index
    %c0_9 = arith.constant 0 : index
    %c0_10 = arith.constant 0 : index
    %15 = vector.load %arg6[%c0_8, %c0_9, %c0_10] : memref<2x64x256xf32, #tpu.memory_space<vmem>>, vector<2x64x128xf32>
    tpu.vector_store %arg6[%c0_8, %c0_9, %c0_10], %14 {strides = array<i32>} : memref<2x64x256xf32, #tpu.memory_space<vmem>>, vector<2x64x128xf32>,
    %c0_11 = arith.constant 0 : index
    %c0_12 = arith.constant 0 : index
    %c128 = arith.constant 128 : index
    %16 = vector.load %arg6[%c0_11, %c0_12, %c128] : memref<2x64x256xf32, #tpu.memory_space<vmem>>, vector<2x64x128xf32>
    tpu.vector_store %arg6[%c0_11, %c0_12, %c128], %13 {strides = array<i32>} : memref<2x64x256xf32, #tpu.memory_space<vmem>>, vector<2x64x128xf32>,
    return
  }
  func.func @transform_0(%arg0: i32, %arg1: i32) -> (i32, i32, i32) {
    %c0_i32 = arith.constant 0 : i32
    %c0_i32_0 = arith.constant 0 : i32
    return %arg0, %arg1, %c0_i32 : i32, i32, i32
  }
  func.func @transform_1(%arg0: i32, %arg1: i32) -> (i32, i32) {
    %c0_i32 = arith.constant 0 : i32
    %c0_i32_0 = arith.constant 0 : i32
    %c0_i32_1 = arith.constant 0 : i32
    return %c0_i32, %c0_i32_0 : i32, i32
  }
  func.func @transform_2(%arg0: i32, %arg1: i32) -> (i32, i32) {
    %c0_i32 = arith.constant 0 : i32
    %c0_i32_0 = arith.constant 0 : i32
    %c0_i32_1 = arith.constant 0 : i32
    return %c0_i32, %c0_i32_0 : i32, i32
  }
  func.func @transform_3(%arg0: i32, %arg1: i32) -> (i32, i32) {
    %c0_i32 = arith.constant 0 : i32
    %c0_i32_0 = arith.constant 0 : i32
    %c0_i32_1 = arith.constant 0 : i32
    return %c0_i32, %c0_i32_0 : i32, i32
  }
  func.func @transform_4(%arg0: i32, %arg1: i32) -> (i32, i32, i32) {
    %c0_i32 = arith.constant 0 : i32
    %c0_i32_0 = arith.constant 0 : i32
    return %arg0, %arg1, %c0_i32 : i32, i32, i32
  }
}

</mosaic_0001>

<bundles_post_ra>
// kernel: tpu_custom_call.1
= control target key start
LH: loop header
LB: loop body
LE: loop exit
PB: predicated region body
PF: predicated region fallthrough
CT: control target
= control target key end

     0   :  { %9 = vsyncpa [#allocation3], 0  ;;  %s418_s0 = inlined_call_operand.hbm [shape: f32[2,64,128], index: 0, kind: input, shape index: {}]   ;;  %s419_s1 = inlined_call_operand.hbm [shape: f32[2,32], index: 1, kind: input, shape index: {}]   ;;  %s420_s2 = inlined_call_operand.hbm [shape: f32[32,128], index: 2, kind: input, shape index: {}]   ;;  %s421_s3 = inlined_call_operand.vmem [shape: f32[1,128], index: 3, kind: input, shape index: {}]   ;;  %s422_s4 = inlined_call_operand.hbm [shape: f32[2,64,256], index: 4, kind: output, shape index: {}]  }
   0x1   :  { %10 = vsyncpa [#allocation6], 0 }
   0x2   :  { %11 = vsyncpa [#allocation4], 0  ;;  %s360_s15 = smov [#allocation5]   ;;  %s361_s17 = smov [#allocation2]  }
   0x3   :  { %s30_s16 = sshll.u32 %s360_s15, 4  ;;  %s17_s18 = sshll.u32 %s361_s17, 4  ;;  %s31_s16 = int_to_ptr.vmem [resolvable:$true] %s30_s16  ;;  %s18_s18 = int_to_ptr.vmem [resolvable:$true] %s17_s18 }
   0x4   :  { %s282_s19 = scalar_lea.vmem %s31_s16, 32  ;;  %p287_p1 = scmp.lt.s32.totalorder %s31_s16, %s31_s16 }
   0x5   :  { %p283_p0 = scmp.ne.s32.totalorder %s31_s16, %s282_s19  ;;  %p288_p2 = scmp.lt.s32.totalorder %s282_s19, %s282_s19 }
   0x7   :  { %p289_p3 = por %p288_p2, %p287_p1 }
   0x9   :  { %p290_p4 = pnand %p289_p3, %p283_p0 }
   0xb   :  { %293 = shalt.err (!%p290_p4)
}
   0xc   :  { %33 = dma.hbm_to_vmem [thread:$0]  %s419_s1, 32, %s31_s16, [#allocation6]  }
   0xd   :  { %s302_s22 = scalar_lea.vmem %s18_s18, 2048  ;;  %p307_p6 = scmp.lt.s32.totalorder %s18_s18, %s18_s18 }
   0xe   :  { %p303_p5 = scmp.ne.s32.totalorder %s18_s18, %s302_s22  ;;  %p308_p7 = scmp.lt.s32.totalorder %s302_s22, %s302_s22 }
  0x10   :  { %p309_p8 = por %p308_p7, %p307_p6 }
  0x12   :  { %p310_p9 = pnand %p309_p8, %p303_p5 }
  0x14   :  { %313 = shalt.err (!%p310_p9)
}
  0x15   :  { %s362_s23 = smov 128   ;;  %s363_s24 = smov 8  }
  0x16   :  { %23 = dma.hbm_to_vmem [thread:$0]  %s418_s0, 2048, %s18_s18, [#allocation3], %s362_s23, %s362_s23, %s363_s24  }
  0x17   :  { %s364_s27 = smov [#allocation7]  }
  0x18   :  { %s39_s28 = sshll.u32 %s364_s27, 4  ;;  %s40_s28 = int_to_ptr.vmem [resolvable:$true] %s39_s28 }
  0x19   :  { %s322_s29 = scalar_lea.vmem %s40_s28, 512  ;;  %p327_p11 = scmp.lt.s32.totalorder %s40_s28, %s40_s28 }
  0x1a   :  { %p323_p10 = scmp.ne.s32.totalorder %s40_s28, %s322_s29  ;;  %p328_p12 = scmp.lt.s32.totalorder %s322_s29, %s322_s29 }
  0x1c   :  { %p329_p13 = por %p328_p12, %p327_p11 }
  0x1e   :  { %p330_p0 = pnand %p329_p13, %p323_p10 }
  0x20   :  { %333 = shalt.err (!%p330_p0)
}
  0x21   :  { %45 = dma.hbm_to_vmem [thread:$0]  %s420_s2, 512, %s40_s28, [#allocation6], %s362_s23, %s362_s23, %s363_s24  }
  0x22   :  { %354 = dma.done.wait [#allocation3], 2048  }
  0x23   :  { %355 = vsyncadd [#allocation3], 4294965248 }
  0x24   :  { %356 = dma.done.wait [#allocation6], 544  }
  0x25   :  { %357 = vsyncadd [#allocation6], 4294966752  ;;  %v365_v0 = vmov 0.0   ;;  %vm366_vm0 = vmmov 0   ;;  %v63_v1 = vld [vmem:[#allocation7 + $0x18] sm:$0xff]  ;;  %v62_v2 = vld [vmem:[#allocation7 + $0x10] sm:$0xff]  ;;  %v150_v24 = vlaneseq }
  0x26   :  { %252 = vmatprep.subr.mxu0 %v365_v0  ;;  %260 = vmatprep.mubr.msk.f32.mxu0 %vm366_vm0, %v365_v0  ;;  %v61_v3 = vld [vmem:[#allocation7 + $0x8] sm:$0xff]  ;;  %v60_v4 = vld [vmem:[#allocation7] sm:$0xff]  ;;  %v59_v5 = vld [vmem:[#allocation5] sm:$0x3]  ;;  %vm71_vm1 = vcmask 261120   ;;  %s368_s5 = smov [#allocation8]  }
  0x27   :  { %253 = vmatpush3.msra.mxu0 %v63_v1  ;;  %v179_v6 = vld [vmem:[#allocation2] sm:$0xff]  ;;  %v180_v7 = vld [vmem:[#allocation2 + $0x8] sm:$0xff]  ;;  %v181_v8 = vld [vmem:[#allocation2 + $0x10] sm:$0xff]  ;;  %v367_v22 = vmov 1966171168   ;;  %v151_v26 = vshrl.u32 %v150_v24, 7 }
  0x28   :  { %254 = vmatprep.subr.mxu0 %v365_v0  ;;  %v182_v9 = vld [vmem:[#allocation2 + $0x18] sm:$0xff]  ;;  %v183_v10 = vld [vmem:[#allocation2 + $0x20] sm:$0xff]  ;;  %v184_v11 = vld [vmem:[#allocation2 + $0x28] sm:$0xff]  ;;  %195 = vst [vmem:[#allocation8] sm:$0xff] %v179_v6  ;;  %v148_v23 = vunpack.c.l.s4 %v367_v22  ;;  %s232_s6 = sshll.u32 %s368_s5, 4  ;;  %s408_s6 = int_to_ptr.vmem [resolvable:$true] %s232_s6 }
  0x29   :  { %255 = vmatpush3.msra.mxu0 %v62_v2  ;;  %196 = vst [vmem:[#allocation8 + $0x10] sm:$0xff] %v180_v7  ;;  %197 = vst [vmem:[#allocation8 + $0x20] sm:$0xff] %v181_v8  ;;  %v185_v12 = vld [vmem:[#allocation2 + $0x30] sm:$0xff]  ;;  %v186_v13 = vld [vmem:[#allocation2 + $0x38] sm:$0xff]  ;;  %v171_v34 = vsub.s32 0, %v151_v26  ;;  %p339_p2 = scmp.lt.s32.totalorder %s408_s6, %s408_s6 }
  0x2a   :  { %256 = vmatprep.subr.mxu0 %v365_v0  ;;  %v187_v14 = vld [vmem:[#allocation2 + $0x40] sm:$0xff]  ;;  %198 = vst [vmem:[#allocation8 + $0x30] sm:$0xff] %v182_v9  ;;  %199 = vst [vmem:[#allocation8 + $0x40] sm:$0xff] %v183_v10  ;;  %v188_v15 = vld [vmem:[#allocation2 + $0x48] sm:$0xff]  ;;  %v149_v25 = vunpack.c.0.s8 %v148_v23 }
  0x2b   :  { %257 = vmatpush3.msra.mxu0 %v61_v3  ;;  %200 = vst [vmem:[#allocation8 + $0x50] sm:$0xff] %v184_v11  ;;  %v189_v16 = vld [vmem:[#allocation2 + $0x50] sm:$0xff]  ;;  %v190_v17 = vld [vmem:[#allocation2 + $0x58] sm:$0xff]  ;;  %201 = vst [vmem:[#allocation8 + $0x60] sm:$0xff] %v185_v12 }
  0x2c   :  { %258 = vmatprep.subr.mxu0 %v365_v0  ;;  %202 = vst [vmem:[#allocation8 + $0x70] sm:$0xff] %v186_v13  ;;  %203 = vst [vmem:[#allocation8 + $0x80] sm:$0xff] %v187_v14  ;;  %v191_v18 = vld [vmem:[#allocation2 + $0x60] sm:$0xff]  ;;  %v192_v19 = vld [vmem:[#allocation2 + $0x68] sm:$0xff]  ;;  %v152_v30 = vsub.s32 %v149_v25, %v151_v26 }
  0x2d   :  { %259 = vmatpush3.msra.mxu0 %v60_v4  ;;  %v193_v20 = vld [vmem:[#allocation2 + $0x70] sm:$0xff]  ;;  %204 = vst [vmem:[#allocation8 + $0x90] sm:$0xff] %v188_v15  ;;  %205 = vst [vmem:[#allocation8 + $0xa0] sm:$0xff] %v189_v16  ;;  %v194_v21 = vld [vmem:[#allocation2 + $0x78] sm:$0xff] }
  0x2e   :  { %261 = vmatmul.mubr.msk.f32.vlgmr.msra.gmra.mxu0 %vm71_vm1, %v59_v5  ;;  %206 = vst [vmem:[#allocation8 + $0xb0] sm:$0xff] %v190_v17  ;;  %207 = vst [vmem:[#allocation8 + $0xc0] sm:$0xff] %v191_v18  ;;  %v245_v27 = vld [vmem:[%s421_s3] ss:$0 sm:$0xff]  ;;  %s334_s3 = scalar_lea.vmem %s408_s6, 4096 }
  0x2f   :  { %208 = vst [vmem:[#allocation8 + $0xd0] sm:$0xff] %v192_v19  ;;  %209 = vst [vmem:[#allocation8 + $0xe0] sm:$0xff] %v193_v20  ;;  %p335_p1 = scmp.ne.s32.totalorder %s408_s6, %s334_s3  ;;  %p340_p3 = scmp.lt.s32.totalorder %s334_s3, %s334_s3 }
  0x30   :  { %210 = vst [vmem:[#allocation8 + $0xf0] sm:$0xff] %v194_v21 }
  0x31   :  { %p341_p4 = por %p340_p3, %p339_p2 }
  0x33   :  { %p342_p5 = pnand %p341_p4, %p335_p1 }
  0xee   :  { %v141_v28 = vpop.f32.mrf.mxu0 }
  0xef   :  { %v142_v29 = vadd.f32 %v245_v27, %v141_v28 }
  0xf0   :  { %v262_v31 = vpop.f32.mrf.mxu0 }
  0xf1   :  { %v145_v32 = vmax.f32 %v142_v29, 0.0 }
  0xf3   :  { %v153_v33 = vrot.slane %v145_v32, %v152_v30 }
  0xf5   :  { %v154_v35 = vcombine.high %v153_v33, %v153_v33  ;;  %v161_v36 = vrot.slane %v153_v33, %v152_v30 }
  0xf7   :  { %v168_v37 = vrot.slane %v154_v35, %v152_v30  ;;  %v172_v38 = vrot.slane %v161_v36, %v171_v34 }
  0xf9   :  { %v176_v39 = vrot.slane %v168_v37, %v171_v34  ;;  %211 = vst [vmem:[#allocation8 + $0x8] sm:$0xff] %v172_v38  ;;  %212 = vst [vmem:[#allocation8 + $0x18] sm:$0xff] %v172_v38 }
  0xfa   :  { %213 = vst [vmem:[#allocation8 + $0x28] sm:$0xff] %v172_v38  ;;  %214 = vst [vmem:[#allocation8 + $0x38] sm:$0xff] %v172_v38 }
  0xfb   :  { %215 = vst [vmem:[#allocation8 + $0x48] sm:$0xff] %v172_v38  ;;  %216 = vst [vmem:[#allocation8 + $0x58] sm:$0xff] %v172_v38 }
  0xfc   :  { %217 = vst [vmem:[#allocation8 + $0x68] sm:$0xff] %v172_v38  ;;  %218 = vst [vmem:[#allocation8 + $0x78] sm:$0xff] %v172_v38 }
  0xfd   :  { %219 = vst [vmem:[#allocation8 + $0x88] sm:$0xff] %v176_v39  ;;  %220 = vst [vmem:[#allocation8 + $0x98] sm:$0xff] %v176_v39 }
  0xfe   :  { %221 = vst [vmem:[#allocation8 + $0xa8] sm:$0xff] %v176_v39  ;;  %222 = vst [vmem:[#allocation8 + $0xb8] sm:$0xff] %v176_v39 }
  0xff   :  { %223 = vst [vmem:[#allocation8 + $0xc8] sm:$0xff] %v176_v39  ;;  %224 = vst [vmem:[#allocation8 + $0xd8] sm:$0xff] %v176_v39 }
 0x100   :  { %225 = vst [vmem:[#allocation8 + $0xe8] sm:$0xff] %v176_v39  ;;  %226 = vst [vmem:[#allocation8 + $0xf8] sm:$0xff] %v176_v39 }
 0x101   :  { %345 = shalt.err (!%p342_p5)
}
 0x102   :  { %s369_s7 = smov 256   ;;  %s370_s8 = smov 16  }
 0x103   :  { %238 = dma.vmem_to_hbm [thread:$0]  %s408_s6, 4096, %s422_s4, [#allocation4], %s369_s7, %s369_s7, %s370_s8  }
 0x104   :  { %358 = dma.done.wait [#allocation4], 4096  }
 0x105   :  { %359 = vsyncadd [#allocation4], 4294963200 }
 0x106   :  { %242 = vsyncpa [#allocation3], 1 }
 0x107   :  { %243 = vsyncpa [#allocation6], 1 }
 0x108   :  { %244 = vsyncpa [#allocation4], 1 }

</bundles_post_ra>
